<compile_context>
chip_gen: v5e
topology: v5e:2x2
jax: 0.10.0
libtpu: 0.0.40
codegen_flags: <defaults>
</compile_context>

<pallas_src>
import functools

import jax
import jax.numpy as jnp
from jax.experimental import pallas as pl
from jax.experimental.pallas import tpu as pltpu

HIDDEN = 256


def _cdiv(a, b):
    return -(-a // b)


def _round_up(x, m):
    return _cdiv(x, m) * m


def actor_kernel(x_ref, w1_ref, w2_ref, w34_ref, b_ref, out_ref, *, action_dim):
    """One batch tile: two hidden layers + fused (mu || std) head.

    x_ref   : [TB, state_dim]   (f32, cast to weight dtype in-kernel)
    w1_ref  : [state_dim, 256]      w2_ref : [256, 256]
    w34_ref : [256, HEAD_PAD]       (cols [0:A]=w3, [A:2A]=w4, rest zero)
    b_ref   : [1, 2*256 + HEAD_PAD] (b1 | b2 | padded b3||b4, f32)
    out_ref : [TB, HEAD_PAD]        (cols [0:A]=mu, [A:2A]=std, rest garbage)
    """
    w_dtype = w1_ref.dtype

    b1 = b_ref[:, :HIDDEN]
    b2 = b_ref[:, HIDDEN:2 * HIDDEN]
    b34 = b_ref[:, 2 * HIDDEN:]

    x = x_ref[...].astype(w_dtype)

    # layer 1 + relu (f32 accumulation, f32 bias)
    h = jnp.dot(x, w1_ref[...], preferred_element_type=jnp.float32) + b1
    h = jnp.maximum(h, 0.0)

    # layer 2 + relu
    h = jnp.dot(h.astype(w_dtype), w2_ref[...],
                preferred_element_type=jnp.float32) + b2
    h = jnp.maximum(h, 0.0)

    # fused heads: one MXU pass produces mu and log_std lanes together
    heads = jnp.dot(h.astype(w_dtype), w34_ref[...],
                    preferred_element_type=jnp.float32) + b34

    # std transform: relu -> clamp(-20, 2) -> exp (matches PyTorch order).
    # Applied over the whole head slab (mu + padding lanes included): for
    # action_dim <= 64 the std columns share one 128-lane vreg group anyway and
    # the EUP has slack under the MXU, so trimming buys nothing.  Mu lanes are
    # selected back below.
    log_std = jnp.clip(jnp.maximum(heads, 0.0), -20.0, 2.0)
    std = jnp.exp(log_std)

    col = jax.lax.broadcasted_iota(jnp.int32, heads.shape, 1)
    out_ref[...] = jnp.where(col < action_dim, heads, std).astype(out_ref.dtype)


def actor_forward(state, params, *, block_b=1024,
                  weight_dtype=jnp.bfloat16, out_dtype=jnp.bfloat16):
    """state: [B, state_dim] float32. params: dict (w1,b1,...,w4,b4).

    Returns (mu, std) each [B, action_dim] float32.
    """
    B, state_dim = state.shape
    action_dim = params["w3"].shape[1]
    head_pad = _round_up(2 * action_dim, 128)          # lane-dense fused head width

    # ---- pack / pad parameters (wrapper-side layout plumbing) ----------------
    w34 = jnp.zeros((HIDDEN, head_pad), jnp.float32)
    w34 = w34.at[:, :action_dim].set(params["w3"])
    w34 = w34.at[:, action_dim:2 * action_dim].set(params["w4"])

    b34 = jnp.zeros((1, head_pad), jnp.float32)
    b34 = b34.at[:, :action_dim].set(params["b3"].reshape(1, -1))
    b34 = b34.at[:, action_dim:2 * action_dim].set(params["b4"].reshape(1, -1))

    b_packed = jnp.concatenate(
        [params["b1"].reshape(1, -1), params["b2"].reshape(1, -1), b34], axis=1)

    w1 = params["w1"].astype(weight_dtype)
    w2 = params["w2"].astype(weight_dtype)
    w34 = w34.astype(weight_dtype)

    # ---- batch tiling: guarantee >=2 grid steps when B allows so the DMA
    # pipeline overlaps compute and v7x's second TensorCore gets work. --------
    ALIGN = 16                                          # sublane-safe for f32 & bf16
    n_tiles = max(_cdiv(B, block_b), 2 if B >= 2 * ALIGN else 1)
    tb = _round_up(_cdiv(B, n_tiles), ALIGN)            # batch tile
    bp = _round_up(B, tb)                               # padded batch
    if bp != B:
        state = jnp.pad(state, ((0, bp - B), (0, 0)))
    grid = (bp // tb,)

    b_len = 2 * HIDDEN + head_pad
    w_bytes = jnp.dtype(weight_dtype).itemsize
    cost = pl.CostEstimate(
        flops=2 * bp * HIDDEN * (state_dim + HIDDEN + head_pad),
        transcendentals=bp * head_pad,
        bytes_accessed=(bp * state_dim * 4
                        + (state_dim * HIDDEN + HIDDEN * HIDDEN
                           + HIDDEN * head_pad) * w_bytes
                        + b_len * 4
                        + bp * head_pad * jnp.dtype(out_dtype).itemsize),
    )

    out = pl.pallas_call(
        functools.partial(actor_kernel, action_dim=action_dim),
        out_shape=jax.ShapeDtypeStruct((bp, head_pad), out_dtype),
        grid=grid,
        in_specs=[
            pl.BlockSpec((tb, state_dim), lambda i: (i, 0)),      # state tile
            pl.BlockSpec((state_dim, HIDDEN), lambda i: (0, 0)),  # w1 (resident)
            pl.BlockSpec((HIDDEN, HIDDEN), lambda i: (0, 0)),     # w2 (resident)
            pl.BlockSpec((HIDDEN, head_pad), lambda i: (0, 0)),   # fused w3||w4
            pl.BlockSpec((1, b_len), lambda i: (0, 0)),           # packed biases
        ],
        out_specs=pl.BlockSpec((tb, head_pad), lambda i: (i, 0)),
        compiler_params=pltpu.CompilerParams(
            dimension_semantics=("parallel",)),
        cost_estimate=cost,
    )(state, w1, w2, w34, b_packed)

    # Only [:B, :2*action_dim] is valid -- padded lanes/rows are garbage.
    mu = out[:B, :action_dim].astype(jnp.float32)
    std = out[:B, action_dim:2 * action_dim].astype(jnp.float32)
    return mu, std


def init_actor_params(key, state_dim, action_dim):
    """Deterministic init mimicking torch.nn.Linear default (U[-1/sqrt(fan_in), +])."""
    ks = jax.random.split(key, 8)

    def linear(kw, kb, fan_in, fan_out):
        bound = 1.0 / jnp.sqrt(float(fan_in))
        w = jax.random.uniform(kw, (fan_in, fan_out), jnp.float32, -bound, bound)
        b = jax.random.uniform(kb, (1, fan_out), jnp.float32, -bound, bound)
        return w, b

    w1, b1 = linear(ks[0], ks[1], state_dim, HIDDEN)
    w2, b2 = linear(ks[2], ks[3], HIDDEN, HIDDEN)
    w3, b3 = linear(ks[4], ks[5], HIDDEN, action_dim)
    w4, b4 = linear(ks[6], ks[7], HIDDEN, action_dim)
    return dict(w1=w1, b1=b1, w2=w2, b2=b2, w3=w3, b3=b3, w4=w4, b4=b4)


def actor_forward_ref(state, p):
    """Pure-JAX reference matching the PyTorch module exactly (relu before clamp)."""
    h = jnp.maximum(state @ p["w1"] + p["b1"], 0.0)
    h = jnp.maximum(h @ p["w2"] + p["b2"], 0.0)
    mu = h @ p["w3"] + p["b3"]
    log_std = jnp.clip(jnp.maximum(h @ p["w4"] + p["b4"], 0.0), -20.0, 2.0)
    return mu, jnp.exp(log_std)


if __name__ == "__main__":
    key = jax.random.PRNGKey(0)
    k_param, k_state = jax.random.split(key)

    batch = 32          # >= 32 -> 2 grid steps (exercises the pipelined path)
    state_dim = 8
    action_dim = 4

    params = init_actor_params(k_param, state_dim, action_dim)
    state = jax.random.normal(k_state, (batch, state_dim), jnp.float32)

    mu_ref, std_ref = actor_forward_ref(state, params)

    # f32 path: tight check of the kernel logic.
    mu32, std32 = actor_forward(state, params,
                                weight_dtype=jnp.float32, out_dtype=jnp.float32)
    jax.block_until_ready((mu32, std32))
    assert mu32.shape == (batch, action_dim) and std32.shape == (batch, action_dim)
    assert jnp.allclose(mu32, mu_ref, atol=1e-5, rtol=1e-5)
    assert jnp.allclose(std32, std_ref, atol=1e-5, rtol=1e-5)

    # default (bf16 weights + bf16 output) path: looser tolerance.
    mu, std = actor_forward(state, params)
    jax.block_until_ready((mu, std))
    assert mu.shape == (batch, action_dim) and std.shape == (batch, action_dim)
    assert jnp.allclose(mu, mu_ref, atol=5e-2, rtol=5e-2)
    assert jnp.allclose(std, std_ref, atol=1e-1, rtol=5e-2)

    print("KERNEL_OK")
</pallas_src>

<mosaic_0001>
module attributes {stable_mosaic.version = 11 : i64} {
  func.func @actor_kernel(%arg0: i32, %arg1: memref<16x8xf32, #tpu.memory_space<vmem>>, %arg2: memref<8x256xf32, #tpu.memory_space<vmem>>, %arg3: memref<256x256xf32, #tpu.memory_space<vmem>>, %arg4: memref<256x128xf32, #tpu.memory_space<vmem>>, %arg5: memref<1x640xf32, #tpu.memory_space<vmem>>, %arg6: memref<16x128xf32, #tpu.memory_space<vmem>>) attributes {dimension_semantics = [#tpu.dimension_semantics<parallel>], iteration_bounds = array<i64: 2>, scalar_prefetch = 0 : i64, scratch_operands = 0 : i64, tpu.core_type = #tpu.core_type<tc>, window_params = [{transform_indices = @transform_0, window_bounds = array<i64: 16, 8>}, {pipeline_mode = #tpu.pipeline_mode<synchronous>, transform_indices = @transform_1, window_bounds = array<i64: 8, 256>}, {pipeline_mode = #tpu.pipeline_mode<synchronous>, transform_indices = @transform_2, window_bounds = array<i64: 256, 256>}, {pipeline_mode = #tpu.pipeline_mode<synchronous>, transform_indices = @transform_3, window_bounds = array<i64: 256, 128>}, {pipeline_mode = #tpu.pipeline_mode<synchronous>, transform_indices = @transform_4, window_bounds = array<i64: 1, 640>}, {transform_indices = @transform_5, window_bounds = array<i64: 16, 128>}]} {
    %c0 = arith.constant 0 : index
    %c0_0 = arith.constant 0 : index
    %0 = vector.load %arg5[%c0, %c0_0] : memref<1x640xf32, #tpu.memory_space<vmem>>, vector<1x256xf32>
    %c0_1 = arith.constant 0 : index
    %c256 = arith.constant 256 : index
    %1 = vector.load %arg5[%c0_1, %c256] : memref<1x640xf32, #tpu.memory_space<vmem>>, vector<1x256xf32>
    %c0_2 = arith.constant 0 : index
    %c512 = arith.constant 512 : index
    %2 = vector.load %arg5[%c0_2, %c512] : memref<1x640xf32, #tpu.memory_space<vmem>>, vector<1x128xf32>
    %c0_3 = arith.constant 0 : index
    %c0_4 = arith.constant 0 : index
    %3 = vector.load %arg1[%c0_3, %c0_4] : memref<16x8xf32, #tpu.memory_space<vmem>>, vector<16x8xf32>
    %c0_5 = arith.constant 0 : index
    %c0_6 = arith.constant 0 : index
    %4 = vector.load %arg2[%c0_5, %c0_6] : memref<8x256xf32, #tpu.memory_space<vmem>>, vector<8x256xf32>
    %cst = arith.constant dense<0.000000e+00> : vector<16x256xf32>
    %5 = tpu.matmul %3, %4, %cst {dimension_numbers = #tpu.dot_dimension_numbers<[1], [0], [0], [1], [0, 0, 1, 1], [], []>} : vector<16x8xf32>, vector<8x256xf32>, vector<16x256xf32> -> vector<16x256xf32>
    %6 = vector.broadcast %0 : vector<1x256xf32> to vector<16x256xf32>
    %7 = arith.addf %5, %6 : vector<16x256xf32>
    %cst_7 = arith.constant 0.000000e+00 : f32
    %8 = vector.broadcast %cst_7 : f32 to vector<16x256xf32>
    %9 = arith.maximumf %7, %8 : vector<16x256xf32>
    %c0_8 = arith.constant 0 : index
    %c0_9 = arith.constant 0 : index
    %10 = vector.load %arg3[%c0_8, %c0_9] : memref<256x256xf32, #tpu.memory_space<vmem>>, vector<256x256xf32>
    %cst_10 = arith.constant dense<0.000000e+00> : vector<16x256xf32>
    %11 = tpu.matmul %9, %10, %cst_10 {dimension_numbers = #tpu.dot_dimension_numbers<[1], [0], [0], [1], [0, 0, 1, 1], [], []>} : vector<16x256xf32>, vector<256x256xf32>, vector<16x256xf32> -> vector<16x256xf32>
    %12 = vector.broadcast %1 : vector<1x256xf32> to vector<16x256xf32>
    %13 = arith.addf %11, %12 : vector<16x256xf32>
    %cst_11 = arith.constant 0.000000e+00 : f32
    %14 = vector.broadcast %cst_11 : f32 to vector<16x256xf32>
    %15 = arith.maximumf %13, %14 : vector<16x256xf32>
    %c0_12 = arith.constant 0 : index
    %c0_13 = arith.constant 0 : index
    %16 = vector.load %arg4[%c0_12, %c0_13] : memref<256x128xf32, #tpu.memory_space<vmem>>, vector<256x128xf32>
    %cst_14 = arith.constant dense<0.000000e+00> : vector<16x128xf32>
    %17 = tpu.matmul %15, %16, %cst_14 {dimension_numbers = #tpu.dot_dimension_numbers<[1], [0], [0], [1], [0, 0, 1, 1], [], []>} : vector<16x256xf32>, vector<256x128xf32>, vector<16x128xf32> -> vector<16x128xf32>
    %18 = vector.broadcast %2 : vector<1x128xf32> to vector<16x128xf32>
    %19 = arith.addf %17, %18 : vector<16x128xf32>
    %cst_15 = arith.constant 0.000000e+00 : f32
    %20 = vector.broadcast %cst_15 : f32 to vector<16x128xf32>
    %21 = arith.maximumf %19, %20 : vector<16x128xf32>
    %cst_16 = arith.constant -2.000000e+01 : f32
    %cst_17 = arith.constant 2.000000e+00 : f32
    %22 = vector.broadcast %cst_16 : f32 to vector<16x128xf32>
    %23 = arith.maximumf %22, %21 : vector<16x128xf32>
    %24 = vector.broadcast %cst_17 : f32 to vector<16x128xf32>
    %25 = arith.minimumf %24, %23 : vector<16x128xf32>
    %26 = math.exp %25 : vector<16x128xf32>
    %27 = tpu.iota {dimensions = array<i32: 1>} : vector<16x128xi32>
    %c4_i32 = arith.constant 4 : i32
    %28 = vector.broadcast %c4_i32 : i32 to vector<16x128xi32>
    %29 = arith.cmpi slt, %27, %28 : vector<16x128xi32>
    %30 = arith.select %29, %19, %26 : vector<16x128xi1>, vector<16x128xf32>
    %c0_18 = arith.constant 0 : index
    %c0_19 = arith.constant 0 : index
    %31 = vector.load %arg6[%c0_18, %c0_19] : memref<16x128xf32, #tpu.memory_space<vmem>>, vector<16x128xf32>
    tpu.vector_store %arg6[%c0_18, %c0_19], %30 {strides = array<i32>} : memref<16x128xf32, #tpu.memory_space<vmem>>, vector<16x128xf32>,
    return
  }
  func.func @transform_0(%arg0: i32) -> (i32, i32) {
    %c0_i32 = arith.constant 0 : i32
    %c0_i32_0 = arith.constant 0 : i32
    return %arg0, %c0_i32 : i32, i32
  }
  func.func @transform_1(%arg0: i32) -> (i32, i32) {
    %c0_i32 = arith.constant 0 : i32
    %c0_i32_0 = arith.constant 0 : i32
    %c0_i32_1 = arith.constant 0 : i32
    return %c0_i32, %c0_i32_0 : i32, i32
  }
  func.func @transform_2(%arg0: i32) -> (i32, i32) {
    %c0_i32 = arith.constant 0 : i32
    %c0_i32_0 = arith.constant 0 : i32
    %c0_i32_1 = arith.constant 0 : i32
    return %c0_i32, %c0_i32_0 : i32, i32
  }
  func.func @transform_3(%arg0: i32) -> (i32, i32) {
    %c0_i32 = arith.constant 0 : i32
    %c0_i32_0 = arith.constant 0 : i32
    %c0_i32_1 = arith.constant 0 : i32
    return %c0_i32, %c0_i32_0 : i32, i32
  }
  func.func @transform_4(%arg0: i32) -> (i32, i32) {
    %c0_i32 = arith.constant 0 : i32
    %c0_i32_0 = arith.constant 0 : i32
    %c0_i32_1 = arith.constant 0 : i32
    return %c0_i32, %c0_i32_0 : i32, i32
  }
  func.func @transform_5(%arg0: i32) -> (i32, i32) {
    %c0_i32 = arith.constant 0 : i32
    %c0_i32_0 = arith.constant 0 : i32
    return %arg0, %c0_i32 : i32, i32
  }
}

</mosaic_0001>

<bundles_post_ra>
// kernel: tpu_custom_call.1
= control target key start
LH: loop header
LB: loop body
LE: loop exit
PB: predicated region body
PF: predicated region fallthrough
CT: control target
= control target key end

     0   :  { %10 = vsyncpa [#allocation3], 0  ;;  %s1120_s0 = inlined_call_operand.vmem [shape: f32[32,8], index: 0, kind: input, shape index: {}]   ;;  %s1121_s1 = inlined_call_operand.vmem [shape: f32[8,256], index: 1, kind: input, shape index: {}]   ;;  %s1122_s2 = inlined_call_operand.hbm [shape: f32[256,256], index: 2, kind: input, shape index: {}]   ;;  %s1123_s3 = inlined_call_operand.hbm [shape: f32[256,128], index: 3, kind: input, shape index: {}]   ;;  %s1124_s4 = inlined_call_operand.vmem [shape: f32[1,640], index: 4, kind: input, shape index: {}]   ;;  %s1125_s5 = inlined_call_operand.hbm [shape: f32[32,128], index: 5, kind: output, shape index: {}]  }
   0x1   :  { %11 = vsyncpa [#allocation6], 0 }
   0x2   :  { %12 = vsyncpa [#allocation4], 0 }
   0x3   :  { %14 = vsyncpa [#allocation4 + $0x1], 0  ;;  %s986_s18 = smov 0   ;;  %s988_s19 = smov 0  }
   0x4   :  { %s990_s20 = smov 0   ;;  %s992_s21 = smov 0  }
   0x5 LB: > { %s1007_s22 = sadd.s32 4294967295, %s946_s21   ;;  %s692_s23 = sadd.s32 4294967294, %s946_s21   ;;  %s946_s21 = sphi %s992_s21, %s1132_s21   ;;  %s942_s20 = sphi %s990_s20, %s1131_s20   ;;  %s938_s19 = sphi %s988_s19, %s1130_s19   ;;  %s934_s18 = sphi %s986_s18, %s1129_s18  }
   0x6   : > { %s1011_s24 = sadd.s32 1, %s946_s21   ;;  %s137_s25 = sadd.s32 1, %s942_s20 }
   0x7   : > { %s134_s26 = ssub.s32 %s946_s21, %s1011_s24  ;;  %p147_p0 = scmp.ne.s32.totalorder %s942_s20, %s938_s19 }
   0x8   : > { %p135_p1 = scmp.eq.s32.totalorder %s134_s26, 0  ;;  %p148_p2 = scmp.eq.s32.totalorder %s1007_s22, 1 }
   0x9   : > { %p153_p3 = scmp.ne.s32.totalorder %s938_s19, %s934_s18  ;;  %p154_p4 = scmp.eq.s32.totalorder %s692_s23, 1 }
   0xa   : > { %s1022_s27 = scalar_select %p135_p1, %s942_s20, %s137_s25  }
   0xb   : > { %p1024_p5 = por %p148_p2, %p147_p0  ;;  %p1028_p6 = por %p154_p4, %p153_p3 }
   0xc   : > { %p693_p7 = scmp.ge.s32.totalorder %s946_s21, 1  ;;  %p161_p8 = scmp.lt.s32.totalorder %s946_s21, 3 }
   0xd   : > { %p766_p9 = scmp.eq.s32.totalorder %s1007_s22, 0  ;;  %s175_s8 = sshll.u32 %s1122_s2, 4  ;;  %s176_s8 = int_to_ptr.hbm [resolvable:$true] %s175_s8 }
   0xe   : > { %p1035_p10 = pnand %p693_p7, %p161_p8  ;;  %s948_s9 = smov [#allocation2]  }
   0xf   : > { %s177_s10 = sshll.u32 %s948_s9, 4  ;;  %s189_s13 = sshll.u32 %s1123_s3, 4  ;;  %s178_s10 = int_to_ptr.vmem [resolvable:$true] %s177_s10  ;;  %s190_s13 = int_to_ptr.hbm [resolvable:$true] %s189_s13 }
  0x10   : > { %p755_p11 = pneg %p1035_p10  ;;  %s949_s14 = smov 256  }
  0x11   : > { %s950_s15 = smov 16   ;;  %s951_s16 = smov [#allocation5]  }
  0x12   : > { %p756_p12 = pnand %p766_p9, %p755_p11  ;;  %s191_s17 = sshll.u32 %s951_s16, 4  ;;  %s192_s17 = int_to_ptr.vmem [resolvable:$true] %s191_s17 }
  0x13   : > { %s952_s23 = smov 128   ;;  %s953_s25 = smov 8  }
  0x14   : > { %758 = dma.hbm_to_vmem [thread:$0]  (!%p756_p12), %s176_s8, 8192, %s178_s10, [#allocation3], %s949_s14, %s949_s14, %s950_s15  }
  0x15   : > { %761 = dma.hbm_to_vmem [thread:$0]  (!%p756_p12), %s190_s13, 4096, %s192_s17, [#allocation6], %s952_s23, %s952_s23, %s953_s25  }
  0x16   : > { %219 = sbr.rel (%p1035_p10) target bundleno = 469 (0x1d5), region = 40 }
  0x1b   : > { %921 = dma.done.wait (%p766_p9), [#allocation3], 8192  }
  0x1c   : > { %923 = vsyncadd (%p766_p9), [#allocation3], 4294959104 }
  0x1d   : > { %925 = dma.done.wait (%p766_p9), [#allocation6], 4096  }
  0x1e   : > { %927 = vsyncadd (%p766_p9), [#allocation6], 4294963200  ;;  %s701_s26 = sshll.u32 %s1007_s22, 1  ;;  %vm272_vm0 = vcmask 64512   ;;  %v265_v0 = vld [vmem:[%s1121_s1] sm:$0xff]  ;;  %v266_v2 = vld [vmem:[%s1121_s1 + $0x8] sm:$0xff] }
  0x1f   : > { %p254_p13 = scmp.lt.s32.totalorder %s701_s26, 3  ;;  %294 = vmatpush.msra.mxu0 %v265_v0  ;;  %317 = vmatpush.msra.mxu1 %v266_v2  ;;  %v359_v3 = vld [vmem:[#allocation2 + $0xf0] sm:$0xff]  ;;  %v360_v4 = vld [vmem:[#allocation2 + $0xf8] sm:$0xff]  ;;  %v357_v5 = vld [vmem:[#allocation2 + $0xe0] sm:$0xff]  ;;  %s250_s25 = sand.u32 1, %s938_s19  }
  0x20   : > { %v391_v6 = vld [vmem:[#allocation2 + $0x1f0] sm:$0xff]  ;;  %v358_v7 = vld [vmem:[#allocation2 + $0xe8] sm:$0xff]  ;;  %398 = vmatpush.msra.mxu2 %v359_v3  ;;  %v392_v8 = vld [vmem:[#allocation2 + $0x1f8] sm:$0xff]  ;;  %s712_s7 = sshll.u32 %s1007_s22, 4  ;;  %s593_s12 = scalar_lea.sflag [#allocation4], %s250_s25 }
  0x21   : > { %s1134_s26 = smov (!%p254_p13, %s701_s26), 3  ;;  %444 = vmatpush.msrb.mxu0 %v360_v4  ;;  %v389_v9 = vld [vmem:[#allocation2 + $0x1e0] sm:$0xff]  ;;  %421 = vmatpush.msra.mxu3 %v391_v6  ;;  %v355_v10 = vld [vmem:[#allocation2 + $0xd0] sm:$0xff]  ;;  %v356_v11 = vld [vmem:[#allocation2 + $0xd8] sm:$0xff]  ;;  %s604_s9 = scalar_lea.hbm %s1125_s5, %s712_s7 }
  0x22   : > { %s702_s6 = sshll.u32 %s1134_s26, 3  ;;  %467 = vmatpush.msrb.mxu1 %v392_v8  ;;  %v390_v12 = vld [vmem:[#allocation2 + $0x1e8] sm:$0xff]  ;;  %399 = vmatpush.msra.mxu2 %v357_v5  ;;  %v387_v13 = vld [vmem:[#allocation2 + $0x1d0] sm:$0xff]  ;;  %v388_v14 = vld [vmem:[#allocation2 + $0x1d8] sm:$0xff]  ;;  %s700_s26 = sshll.u32 %s250_s25, 4 }
  0x23   : > { %s1063_s8 = scalar_lea.vmem %s1120_s0, %s702_s6  ;;  %445 = vmatpush.msrb.mxu0 %v358_v7  ;;  %422 = vmatpush.msra.mxu3 %v389_v9  ;;  %v353_v15 = vld [vmem:[#allocation2 + $0xc0] sm:$0xff]  ;;  %v354_v16 = vld [vmem:[#allocation2 + $0xc8] sm:$0xff]  ;;  %v351_v18 = vld [vmem:[#allocation2 + $0xb0] sm:$0xff]  ;;  %s252_s6 = scalar_lea.vmem [#allocation7], %s700_s26 }
  0x24   : > { %v263_v1 = vld [vmem:[%s1063_s8] sm:$0xff]  ;;  %468 = vmatpush.msrb.mxu1 %v390_v12  ;;  %v264_v17 = vld [vmem:[%s1063_s8 + $0x8] sm:$0xff]  ;;  %400 = vmatpush.msra.mxu2 %v355_v10  ;;  %v352_v20 = vld [vmem:[#allocation2 + $0xb8] sm:$0xff]  ;;  %s605_s10 = sshll.u32 %s252_s6, 4  ;;  %s607_s11 = sshll.u32 %s604_s9, 4  ;;  %s606_s10 = int_to_ptr.vmem [resolvable:$true] %s605_s10  ;;  %s608_s11 = int_to_ptr.hbm [resolvable:$true] %s607_s11 }
  0x25   : > { %703 = vmatmul.msk.f32.vlgmr.msra.gmra.mxu0 %vm272_vm0, %v263_v1  ;;  %705 = vmatmul.msk.f32.vlgmr.msra.gmra.mxu1 %vm272_vm0, %v263_v1  ;;  %v385_v19 = vld [vmem:[#allocation2 + $0x1c0] sm:$0xff]  ;;  %v386_v21 = vld [vmem:[#allocation2 + $0x1c8] sm:$0xff]  ;;  %v383_v23 = vld [vmem:[#allocation2 + $0x1b0] sm:$0xff]  ;;  %s890_s13 = sshra.s32 %s608_s11, 4  ;;  %s896_s16 = scalar_lea.hbm %s1125_s5, 32  ;;  %s891_s13 = int_to_ptr.hbm [resolvable:$true] %s890_s13 }
  0x26   : > { %446 = vmatpush.msrb.mxu0 %v356_v11  ;;  %423 = vmatpush.msra.mxu3 %v387_v13  ;;  %v349_v22 = vld [vmem:[#allocation2 + $0xa0] sm:$0xff]  ;;  %v350_v24 = vld [vmem:[#allocation2 + $0xa8] sm:$0xff]  ;;  %v384_v25 = vld [vmem:[#allocation2 + $0x1b8] sm:$0xff]  ;;  %s892_s14 = scalar_lea.hbm %s891_s13, 16  ;;  %p897_p3 = scmp.lt.s32.totalorder %s891_s13, %s1125_s5 }
  0x27   : > { %469 = vmatpush.msrb.mxu1 %v388_v14  ;;  %401 = vmatpush.msra.mxu2 %v353_v15  ;;  %v347_v26 = vld [vmem:[#allocation2 + $0x90] sm:$0xff]  ;;  %v381_v27 = vld [vmem:[#allocation2 + $0x1a0] sm:$0xff]  ;;  %v348_v28 = vld [vmem:[#allocation2 + $0x98] sm:$0xff]  ;;  %p893_p0 = scmp.ne.s32.totalorder %s891_s13, %s892_s14  ;;  %p898_p4 = scmp.lt.s32.totalorder %s896_s16, %s892_s14 }
  0x28   : > { %447 = vmatpush.msrb.mxu0 %v354_v16  ;;  %424 = vmatpush.msra.mxu3 %v385_v19  ;;  %v382_v29 = vld [vmem:[#allocation2 + $0x1a8] sm:$0xff]  ;;  %v345_v30 = vld [vmem:[#allocation2 + $0x80] sm:$0xff]  ;;  %v379_v31 = vld [vmem:[#allocation2 + $0x190] sm:$0xff] }
  0x29   : > { %402 = vmatpush.msra.mxu2 %v351_v18  ;;  %470 = vmatpush.msrb.mxu1 %v386_v21  ;;  %v346_v32 = vld [vmem:[#allocation2 + $0x88] sm:$0xff]  ;;  %v380_v33 = vld [vmem:[#allocation2 + $0x198] sm:$0xff]  ;;  %v343_v34 = vld [vmem:[#allocation2 + $0x70] sm:$0xff]  ;;  %p894_p1 = pnand %p893_p0, %p1024_p5  ;;  %p899_p7 = por %p898_p4, %p897_p3 }
  0x2a   : > { %448 = vmatpush.msrb.mxu0 %v352_v20  ;;  %425 = vmatpush.msra.mxu3 %v383_v23  ;;  %v377_v35 = vld [vmem:[#allocation2 + $0x180] sm:$0xff]  ;;  %v344_v36 = vld [vmem:[#allocation2 + $0x78] sm:$0xff]  ;;  %v378_v37 = vld [vmem:[#allocation2 + $0x188] sm:$0xff] }
  0x2b   : > { %403 = vmatpush.msra.mxu2 %v349_v22  ;;  %471 = vmatpush.msrb.mxu1 %v384_v25  ;;  %v341_v38 = vld [vmem:[#allocation2 + $0x60] sm:$0xff]  ;;  %v375_v39 = vld [vmem:[#allocation2 + $0x170] sm:$0xff]  ;;  %v342_v40 = vld [vmem:[#allocation2 + $0x68] sm:$0xff]  ;;  %p895_p2 = pneg %p894_p1 }
  0x2c   : > { %449 = vmatpush.msrb.mxu0 %v350_v24  ;;  %426 = vmatpush.msra.mxu3 %v381_v27  ;;  %v376_v41 = vld [vmem:[#allocation2 + $0x178] sm:$0xff]  ;;  %v339_v42 = vld [vmem:[#allocation2 + $0x50] sm:$0xff]  ;;  %v373_v43 = vld [vmem:[#allocation2 + $0x160] sm:$0xff] }
  0x2d   : > { %704 = vmatmul.msk.f32.gmra.mxu0 %vm272_vm0, %v264_v17  ;;  %706 = vmatmul.msk.f32.gmra.mxu1 %vm272_vm0, %v264_v17  ;;  %v340_v44 = vld [vmem:[#allocation2 + $0x58] sm:$0xff]  ;;  %v374_v45 = vld [vmem:[#allocation2 + $0x168] sm:$0xff]  ;;  %v337_v46 = vld [vmem:[#allocation2 + $0x40] sm:$0xff]  ;;  %p900_p8 = pnand %p899_p7, %p895_p2 }
  0x2e   : > { %404 = vmatpush.msra.mxu2 %v347_v26  ;;  %450 = vmatpush.msrb.mxu0 %v348_v28  ;;  %v371_v47 = vld [vmem:[#allocation2 + $0x150] sm:$0xff]  ;;  %v338_v48 = vld [vmem:[#allocation2 + $0x48] sm:$0xff]  ;;  %v372_v49 = vld [vmem:[#allocation2 + $0x158] sm:$0xff] }
  0x2f   : > { %472 = vmatpush.msrb.mxu1 %v382_v29  ;;  %427 = vmatpush.msra.mxu3 %v379_v31  ;;  %v335_v50 = vld [vmem:[#allocation2 + $0x30] sm:$0xff]  ;;  %v369_v51 = vld [vmem:[#allocation2 + $0x140] sm:$0xff]  ;;  %v336_v52 = vld [vmem:[#allocation2 + $0x38] sm:$0xff] }
  0x30   : > { %405 = vmatpush.msra.mxu2 %v345_v30  ;;  %451 = vmatpush.msrb.mxu0 %v346_v32  ;;  %v370_v53 = vld [vmem:[#allocation2 + $0x148] sm:$0xff]  ;;  %v333_v54 = vld [vmem:[#allocation2 + $0x20] sm:$0xff]  ;;  %v367_v55 = vld [vmem:[#allocation2 + $0x130] sm:$0xff] }
  0x31   : > { %473 = vmatpush.msrb.mxu1 %v380_v33  ;;  %428 = vmatpush.msra.mxu3 %v377_v35  ;;  %v334_v56 = vld [vmem:[#allocation2 + $0x28] sm:$0xff]  ;;  %v368_v57 = vld [vmem:[#allocation2 + $0x138] sm:$0xff]  ;;  %v331_v58 = vld [vmem:[#allocation2 + $0x10] sm:$0xff] }
  0x32   : > { %406 = vmatpush.msra.mxu2 %v343_v34  ;;  %452 = vmatpush.msrb.mxu0 %v344_v36  ;;  %v365_v59 = vld [vmem:[#allocation2 + $0x120] sm:$0xff]  ;;  %v332_v60 = vld [vmem:[#allocation2 + $0x18] sm:$0xff]  ;;  %v366_v61 = vld [vmem:[#allocation2 + $0x128] sm:$0xff] }
  0x33   : > { %474 = vmatpush.msrb.mxu1 %v378_v37  ;;  %429 = vmatpush.msra.mxu3 %v375_v39  ;;  %v329_v62 = vld [vmem:[#allocation2] sm:$0xff]  ;;  %v363_v63 = vld [vmem:[#allocation2 + $0x110] sm:$0xff]  ;;  %v330_v0 = vld [vmem:[#allocation2 + $0x8] sm:$0xff] }
  0x34   : > { %407 = vmatpush.msra.mxu2 %v341_v38  ;;  %453 = vmatpush.msrb.mxu0 %v342_v40  ;;  %v364_v1 = vld [vmem:[#allocation2 + $0x118] sm:$0xff]  ;;  %v361_v2 = vld [vmem:[#allocation2 + $0x100] sm:$0xff]  ;;  %v362_v3 = vld [vmem:[#allocation2 + $0x108] sm:$0xff] }
  0x35   : > { %475 = vmatpush.msrb.mxu1 %v376_v41  ;;  %430 = vmatpush.msra.mxu3 %v373_v43  ;;  %v525_v4 = vld [vmem:[#allocation5 + $0xf8] sm:$0xff]  ;;  %v524_v5 = vld [vmem:[#allocation5 + $0xf0] sm:$0xff]  ;;  %v523_v8 = vld [vmem:[#allocation5 + $0xe8] sm:$0xff] }
  0x36   : > { %408 = vmatpush.msra.mxu2 %v339_v42  ;;  %454 = vmatpush.msrb.mxu0 %v340_v44  ;;  %v509_v6 = vld [vmem:[#allocation5 + $0x78] sm:$0xff]  ;;  %v508_v7 = vld [vmem:[#allocation5 + $0x70] sm:$0xff]  ;;  %v507_v9 = vld [vmem:[#allocation5 + $0x68] sm:$0xff] }
  0x37   : > { %476 = vmatpush.msrb.mxu1 %v374_v45  ;;  %431 = vmatpush.msra.mxu3 %v371_v47  ;;  %v522_v10 = vld [vmem:[#allocation5 + $0xe0] sm:$0xff]  ;;  %v521_v12 = vld [vmem:[#allocation5 + $0xd8] sm:$0xff]  ;;  %v520_v14 = vld [vmem:[#allocation5 + $0xd0] sm:$0xff] }
  0x38   : > { %409 = vmatpush.msra.mxu2 %v337_v46  ;;  %455 = vmatpush.msrb.mxu0 %v338_v48  ;;  %v506_v11 = vld [vmem:[#allocation5 + $0x60] sm:$0xff]  ;;  %v505_v13 = vld [vmem:[#allocation5 + $0x58] sm:$0xff]  ;;  %v504_v15 = vld [vmem:[#allocation5 + $0x50] sm:$0xff] }
  0x39   : > { %477 = vmatpush.msrb.mxu1 %v372_v49  ;;  %432 = vmatpush.msra.mxu3 %v369_v51  ;;  %v519_v16 = vld [vmem:[#allocation5 + $0xc8] sm:$0xff]  ;;  %v260_v18 = vld [vmem:[%s1124_s4] sm:$0x3]  ;;  %v517_v21 = vld [vmem:[#allocation5 + $0xb8] sm:$0xff] }
  0x3a   : > { %410 = vmatpush.msra.mxu2 %v335_v50  ;;  %456 = vmatpush.msrb.mxu0 %v336_v52  ;;  %v503_v17 = vld [vmem:[#allocation5 + $0x48] sm:$0xff]  ;;  %v518_v19 = vld [vmem:[#allocation5 + $0xc0] sm:$0xff]  ;;  %v268_v22 = vperm.slane %v260_v18, 0  ;;  %v269_v23 = vperm.slane %v260_v18, 1  ;;  %v501_v24 = vld [vmem:[#allocation5 + $0x38] sm:$0xff]  ;;  %v585_v18 = vlaneseq }
  0x3b   : > { %478 = vmatpush.msrb.mxu1 %v370_v53  ;;  %433 = vmatpush.msra.mxu3 %v367_v55  ;;  %v502_v20 = vld [vmem:[#allocation5 + $0x40] sm:$0xff]  ;;  %v516_v25 = vld [vmem:[#allocation5 + $0xb0] sm:$0xff]  ;;  %v515_v28 = vld [vmem:[#allocation5 + $0xa8] sm:$0xff] }
  0x3c   : > { %411 = vmatpush.msra.mxu2 %v333_v54  ;;  %457 = vmatpush.msrb.mxu0 %v334_v56  ;;  %v514_v33 = vld [vmem:[#allocation5 + $0xa0] sm:$0xff]  ;;  %v500_v40 = vld [vmem:[#allocation5 + $0x30] sm:$0xff]  ;;  %v513_v41 = vld [vmem:[#allocation5 + $0x98] sm:$0xff] }
  0x3d   : > { %479 = vmatpush.msrb.mxu1 %v368_v57  ;;  %434 = vmatpush.msra.mxu3 %v365_v59  ;;  %v499_v42 = vld [vmem:[#allocation5 + $0x28] sm:$0xff]  ;;  %v512_v43 = vld [vmem:[#allocation5 + $0x90] sm:$0xff]  ;;  %v498_v44 = vld [vmem:[#allocation5 + $0x20] sm:$0xff] }
  0x3e   : > { %412 = vmatpush.msra.mxu2 %v331_v58  ;;  %458 = vmatpush.msrb.mxu0 %v332_v60  ;;  %v511_v45 = vld [vmem:[#allocation5 + $0x88] sm:$0xff]  ;;  %v497_v46 = vld [vmem:[#allocation5 + $0x18] sm:$0xff]  ;;  %v510_v47 = vld [vmem:[#allocation5 + $0x80] sm:$0xff] }
  0x3f   : > { %480 = vmatpush.msrb.mxu1 %v366_v61  ;;  %435 = vmatpush.msra.mxu3 %v363_v63  ;;  %v496_v48 = vld [vmem:[#allocation5 + $0x10] sm:$0xff]  ;;  %v495_v49 = vld [vmem:[#allocation5 + $0x8] sm:$0xff]  ;;  %v494_v50 = vld [vmem:[#allocation5] sm:$0xff] }
  0x40   : > { %413 = vmatpush.msra.mxu2 %v329_v62  ;;  %459 = vmatpush.msrb.mxu0 %v330_v0  ;;  %v261_v51 = vld [vmem:[%s1124_s4 + $0x2] sm:$0x3] }
  0x41   : > { %481 = vmatpush.msrb.mxu1 %v364_v1  ;;  %436 = vmatpush.msra.mxu3 %v361_v2  ;;  %v395_v52 = vperm.slane %v261_v51, 1  ;;  %v394_v57 = vperm.slane %v261_v51, 0 }
  0x42   : > { %529 = vmatpush.msra.mxu0 %v509_v6  ;;  %713 = vmatpush.msrb.mxu2 %v509_v6 }
  0x43   : > { %482 = vmatpush.msrb.mxu1 %v362_v3  ;;  %729 = vmatpush.msrb.mxu3 %v525_v4 }
  0x44   : > { %530 = vmatpush.msra.mxu0 %v508_v7  ;;  %714 = vmatpush.msrb.mxu2 %v508_v7 }
  0x45   : > { %552 = vmatpush.msra.mxu1 %v525_v4  ;;  %730 = vmatpush.msrb.mxu3 %v524_v5 }
  0x46   : > { %531 = vmatpush.msra.mxu0 %v507_v9  ;;  %715 = vmatpush.msrb.mxu2 %v507_v9 }
  0x47   : > { %553 = vmatpush.msra.mxu1 %v524_v5  ;;  %731 = vmatpush.msrb.mxu3 %v523_v8 }
  0x48   : > { %532 = vmatpush.msra.mxu0 %v506_v11  ;;  %716 = vmatpush.msrb.mxu2 %v506_v11 }
  0x49   : > { %554 = vmatpush.msra.mxu1 %v523_v8  ;;  %732 = vmatpush.msrb.mxu3 %v522_v10 }
  0x4a   : > { %533 = vmatpush.msra.mxu0 %v505_v13  ;;  %717 = vmatpush.msrb.mxu2 %v505_v13 }
  0x4b   : > { %555 = vmatpush.msra.mxu1 %v522_v10  ;;  %733 = vmatpush.msrb.mxu3 %v521_v12  ;;  %v811_v10 = vld [vmem:[%s1124_s4 + $0x4] ss:$0 sm:$0xff] }
  0x4c   : > { %534 = vmatpush.msra.mxu0 %v504_v15  ;;  %718 = vmatpush.msrb.mxu2 %v504_v15 }
  0x4d   : > { %556 = vmatpush.msra.mxu1 %v521_v12  ;;  %734 = vmatpush.msrb.mxu3 %v520_v14 }
  0x4e   : > { %535 = vmatpush.msra.mxu0 %v503_v17  ;;  %719 = vmatpush.msrb.mxu2 %v503_v17 }
  0x4f   : > { %557 = vmatpush.msra.mxu1 %v520_v14  ;;  %735 = vmatpush.msrb.mxu3 %v519_v16 }
  0x50   : > { %536 = vmatpush.msra.mxu0 %v502_v20  ;;  %720 = vmatpush.msrb.mxu2 %v502_v20  ;;  %v586_v20 = vand.u32 127, %v585_v18 }
  0x51   : > { %558 = vmatpush.msra.mxu1 %v519_v16  ;;  %736 = vmatpush.msrb.mxu3 %v518_v19 }
  0x52   : > { %537 = vmatpush.msra.mxu0 %v501_v24  ;;  %721 = vmatpush.msrb.mxu2 %v501_v24  ;;  %vm587_vm1 = vcmp.lt.s32.totalorder %v586_v20, 4 }
  0x53   : > { %559 = vmatpush.msra.mxu1 %v518_v19  ;;  %737 = vmatpush.msrb.mxu3 %v517_v21 }
  0x54   : > { %538 = vmatpush.msra.mxu0 %v500_v40  ;;  %722 = vmatpush.msrb.mxu2 %v500_v40 }
  0x55   : > { %560 = vmatpush.msra.mxu1 %v517_v21  ;;  %738 = vmatpush.msrb.mxu3 %v516_v25 }
  0x56   : > { %539 = vmatpush.msra.mxu0 %v499_v42  ;;  %723 = vmatpush.msrb.mxu2 %v499_v42 }
  0x57   : > { %561 = vmatpush.msra.mxu1 %v516_v25  ;;  %739 = vmatpush.msrb.mxu3 %v515_v28 }
  0x58   : > { %540 = vmatpush.msra.mxu0 %v498_v44  ;;  %724 = vmatpush.msrb.mxu2 %v498_v44 }
  0x59   : > { %562 = vmatpush.msra.mxu1 %v515_v28  ;;  %740 = vmatpush.msrb.mxu3 %v514_v33 }
  0x5a   : > { %541 = vmatpush.msra.mxu0 %v497_v46  ;;  %725 = vmatpush.msrb.mxu2 %v497_v46 }
  0x5b   : > { %563 = vmatpush.msra.mxu1 %v514_v33  ;;  %741 = vmatpush.msrb.mxu3 %v513_v41 }
  0x5c   : > { %542 = vmatpush.msra.mxu0 %v496_v48  ;;  %726 = vmatpush.msrb.mxu2 %v496_v48 }
  0x5d   : > { %564 = vmatpush.msra.mxu1 %v513_v41  ;;  %742 = vmatpush.msrb.mxu3 %v512_v43 }
  0x5e   : > { %543 = vmatpush.msra.mxu0 %v495_v49  ;;  %727 = vmatpush.msrb.mxu2 %v495_v49 }
  0x5f   : > { %565 = vmatpush.msra.mxu1 %v512_v43  ;;  %743 = vmatpush.msrb.mxu3 %v511_v45 }
  0x60   : > { %544 = vmatpush.msra.mxu0 %v494_v50  ;;  %728 = vmatpush.msrb.mxu2 %v494_v50 }
  0x61   : > { %566 = vmatpush.msra.mxu1 %v511_v45  ;;  %744 = vmatpush.msrb.mxu3 %v510_v47 }
  0x63   : > { %567 = vmatpush.msra.mxu1 %v510_v47 }
  0xa2   : > { %v296_v26 = vpop.f32.mrf.mxu0  ;;  %v319_v27 = vpop.f32.mrf.mxu1 }
  0xa3   : > { %v297_v29 = vadd.f32 %v296_v26, %v268_v22  ;;  %v320_v30 = vadd.f32 %v319_v27, %v269_v23 }
  0xa5   : > { %v325_v31 = vmax.f32 %v297_v29, 0.0  ;;  %v326_v32 = vmax.f32 %v320_v30, 0.0 }
  0xa7   : > { %414 = vmatmul.f32.vlgmr.msra.gmra.mxu2 %v325_v31  ;;  %460 = vmatmul.f32.vlgmr.msrb.gmra.mxu0 %v325_v31 }
  0xa8   : > { %437 = vmatmul.f32.vlgmr.msra.gmra.mxu3 %v326_v32  ;;  %483 = vmatmul.f32.vlgmr.msrb.gmra.mxu1 %v326_v32 }
  0xaa   : > { %v299_v34 = vpop.f32.mrf.mxu0  ;;  %v322_v35 = vpop.f32.mrf.mxu1 }
  0xab   : > { %v300_v36 = vadd.f32 %v299_v34, %v268_v22  ;;  %v323_v37 = vadd.f32 %v322_v35, %v269_v23 }
  0xad   : > { %v327_v38 = vmax.f32 %v300_v36, 0.0  ;;  %v328_v39 = vmax.f32 %v323_v37, 0.0 }
  0xaf   : > { %417 = vmatmul.f32.gmra.mxu2 %v327_v38  ;;  %463 = vmatmul.f32.gmra.mxu0 %v327_v38 }
  0xb0   : > { %440 = vmatmul.f32.gmra.mxu3 %v328_v39  ;;  %486 = vmatmul.f32.gmra.mxu1 %v328_v39 }
 0x124   : > { %v461_v53 = vpop.f32.mrf.mxu0 }
 0x125   : > { %v462_v54 = vadd.f32 %v461_v53, %v395_v52  ;;  %v484_v55 = vpop.f32.mrf.mxu1 }
 0x127   : > { %v485_v56 = vadd.f32 %v484_v55, %v462_v54 }
 0x129   : > { %v491_v58 = vmax.f32 %v485_v56, 0.0 }
 0x12a   : > { %v415_v59 = vpop.f32.mrf.mxu2 }
 0x12b   : > { %v416_v60 = vadd.f32 %v415_v59, %v394_v57  ;;  %568 = vmatmul.f32.vlgmr.msra.gmra.mxu1 %v491_v58  ;;  %v438_v61 = vpop.f32.mrf.mxu3 }
 0x12c   : > { %v464_v62 = vpop.f32.mrf.mxu0 }
 0x12d   : > { %v439_v63 = vadd.f32 %v438_v61, %v416_v60  ;;  %v465_v0 = vadd.f32 %v464_v62, %v395_v52  ;;  %v487_v1 = vpop.f32.mrf.mxu1 }
 0x12f   : > { %v490_v2 = vmax.f32 %v439_v63, 0.0  ;;  %v488_v3 = vadd.f32 %v487_v1, %v465_v0 }
 0x131   : > { %v493_v4 = vmax.f32 %v488_v3, 0.0  ;;  %545 = vmatmul.f32.vlgmr.msra.gmra.mxu0 %v490_v2 }
 0x132   : > { %v418_v5 = vpop.f32.mrf.mxu2 }
 0x133   : > { %v419_v6 = vadd.f32 %v418_v5, %v394_v57  ;;  %571 = vmatmul.f32.vlgmr.msrb.gmra.mxu3 %v493_v4  ;;  %v441_v7 = vpop.f32.mrf.mxu3 }
 0x135   : > { %v442_v8 = vadd.f32 %v441_v7, %v419_v6 }
 0x137   : > { %v492_v9 = vmax.f32 %v442_v8, 0.0 }
 0x139   : > { %548 = vmatmul.f32.vlgmr.msrb.gmra.mxu2 %v492_v9 }
 0x1a8   : > { %v569_v13 = vpop.f32.mrf.mxu1 }
 0x1ae   : > { %v546_v11 = vpop.f32.mrf.mxu0 }
 0x1af   : > { %v547_v12 = vadd.f32 %v811_v10, %v546_v11 }
 0x1b1   : > { %v570_v14 = vadd.f32 %v569_v13, %v547_v12 }
 0x1b3   : > { %v575_v15 = vmax.f32 %v570_v14, 0.0 }
 0x1b5   : > { %v577_v16 = vmax.f32 %v575_v15, -20.0 }
 0x1b6   : > { %v572_v23 = vpop.f32.mrf.mxu3 }
 0x1b7   : > { %v579_v17 = vmin.f32 %v577_v16, 2.0 }
 0x1b9   : > { %v581_v19 = vmul.f32 1.442695, %v579_v17 }
 0x1bb   : > { %812 = vpow2.f32 %v581_v19 }
 0x1bc   : > { %v549_v21 = vpop.f32.mrf.mxu2 }
 0x1bd   : > { %v550_v22 = vadd.f32 %v811_v10, %v549_v21 }
 0x1bf   : > { %v573_v24 = vadd.f32 %v572_v23, %v550_v22 }
 0x1c1   : > { %v813_v25 = vpop.eup %812  ;;  %v576_v26 = vmax.f32 %v573_v24, 0.0 }
 0x1c2   : > { %v588_v27 = vsel %vm587_vm1, %v570_v14, %v813_v25 }
 0x1c3   : > { %590 = vst [vmem:[%s252_s6] sm:$0xff] %v588_v27  ;;  %v578_v28 = vmax.f32 %v576_v26, -20.0 }
 0x1c5   : > { %v580_v29 = vmin.f32 %v578_v28, 2.0 }
 0x1c7   : > { %v583_v30 = vmul.f32 1.442695, %v580_v29 }
 0x1c9   : > { %814 = vpow2.f32 %v583_v30 }
 0x1cf   : > { %v815_v31 = vpop.eup %814 }
 0x1d0   : > { %v589_v32 = vsel %vm587_vm1, %v573_v24, %v815_v31 }
 0x1d1   : > { %591 = vst [vmem:[%s252_s6 + $0x8] sm:$0xff] %v589_v32 }
 0x1d2   : > { %903 = shalt.err (!%p900_p8)
}
 0x1d3   : > { %s954_s25 = smov 128   ;;  %s955_s26 = smov 8  }
 0x1d4   : > { %753 = dma.vmem_to_hbm [thread:$0]  (%p1024_p5), %s606_s10, 256, %s608_s11, %s593_s12, %s954_s25, %s954_s25, %s955_s26  }
 0x1d5 PF: > { %p770_p9 = scmp.ge.s32.totalorder %s946_s21, 2  ;;  %s622_s6 = sand.u32 1, %s934_s18  }
 0x1d6   : > { %s623_s7 = scalar_lea.sflag [#allocation4], %s622_s6 }
 0x1d7   : > { %p763_p10 = pnand %p770_p9, %p1028_p6 }
 0x1d9   : > { %p764_p11 = pneg %p763_p10 }
 0x1db   : > { %929 = dma.done.wait (%p764_p11), %s623_s7, 256  }
 0x1dc   : > { %931 = vsyncadd (%p764_p11), %s623_s7, 4294967040  ;;  %p17_p12 = scmp.ge.s32.totalorder %s1011_s24, 4   ;;  %s1129_s18 = smov %s938_s19 }
 0x1dd   : > { %s1130_s19 = smov %s942_s20  ;;  %s1131_s20 = smov %s1022_s27 }
 0x1de   : > { %s1132_s21 = smov %s1011_s24  ;;  %19 = sbr.rel (!%p17_p12) target bundleno = 5 (0x5), region = 84 }
 0x1e3   :  { %629 = vsyncpa [#allocation3], 1 }
 0x1e4   :  { %631 = vsyncpa [#allocation3 + $0x1], 1 }
 0x1e5   :  { %632 = vsyncpa [#allocation6], 1 }
 0x1e6   :  { %633 = vsyncpa [#allocation4], 1 }
 0x1e7   :  { %635 = vsyncpa [#allocation4 + $0x1], 1 }

</bundles_post_ra>
